<compile_context>
chip_gen: v6e
topology: v6e:2x2x1
jax: 0.10.0
libtpu: 0.0.40
codegen_flags: <defaults>
</compile_context>

<pallas_src>
import functools

import jax
import jax.numpy as jnp
from jax.experimental import pallas as pl
from jax.experimental.pallas import tpu as pltpu


def _round_up(v, m):
    return -(-v // m) * m


_MAX_STRIP_POSITIONS = 4096  # output positions (rows * W_out) per grid step


def _pick_strip_rows(H1, W_out, halo):
    """Output rows per H-strip.

    Constraints: TH | H1 (strips tile the dense output exactly), halo | TH (so
    the halo BlockSpec's element offset (s+1)*TH is a multiple of its block
    height), and (TH*W_out) % 128 == 0 (lane-dense output stores).  Prefers
    >= 2 strips and the largest strip under the position cap.  Returns None if
    no strip tiling qualifies (caller falls back to whole-image blocks).
    """
    if halo <= 0:
        return None
    cands = [
        th for th in range(1, H1 + 1)
        if H1 % th == 0 and th % halo == 0 and (th * W_out) % 128 == 0
        and th * W_out <= _MAX_STRIP_POSITIONS
    ]
    if not cands:
        return None
    strict = [th for th in cands if th < H1]
    return max(strict) if strict else max(cands)


def _vmem_block_bytes(shape, itemsize):
    *lead, s2, s1 = shape
    n = 1
    for d in lead:
        n *= d
    return n * _round_up(s2, 8) * _round_up(s1, 128) * itemsize


# ----------------------------------------------------------------------------
# Fused conv kernel: one (batch, H-strip) tile per grid step.
# ----------------------------------------------------------------------------
def _conv_strip_kernel(*refs, KH, dilation, TH, W_out, C_out, use_halo):
    # use_halo=True:
    #   x_ref: (1, TH,   W_out, KWC) bf16  strip input rows [s*TH, (s+1)*TH)
    #   h_ref: (1, halo, W_out, KWC) bf16  halo rows [(s+1)*TH, (s+1)*TH+halo)
    # use_halo=False:
    #   x_ref: (1, Hp,   W_out, KWC) bf16  whole padded image
    # w_ref:   (KH, KWC, C_out_p)    bf16  resident weight (constant index map)
    # o_ref:   (1, C_out, TH*W_out)        lane-dense, NCHW-ordered output block
    # acc_ref: (TH*W_out, C_out_p)   f32   VMEM scratch accumulator
    if use_halo:
        x_ref, h_ref, w_ref, o_ref, acc_ref = refs
    else:
        x_ref, w_ref, o_ref, acc_ref = refs
        h_ref = None
    KWC = x_ref.shape[-1]
    HW = TH * W_out

    # Static loop over the KH taps (typically 3).  Live ranges stay bounded
    # because every partial is folded straight into the VMEM accumulator; a
    # lax.fori_loop is not applicable since the halo split needs static slice
    # sizes per tap.
    for kh in range(KH):
        off = kh * dilation
        wk = w_ref[kh]                                    # (KWC, C_out_p)
        if off == 0:
            # First tap fully initializes the accumulator (no zero-fill pass).
            xm = x_ref[0, 0:TH, :, :]                     # (TH, W_out, KWC)
            acc_ref[...] = jnp.dot(xm.reshape(HW, KWC), wk,
                                   preferred_element_type=jnp.float32)
        elif not use_halo:
            xm = x_ref[0, off:off + TH, :, :]
            acc_ref[...] += jnp.dot(xm.reshape(HW, KWC), wk,
                                    preferred_element_type=jnp.float32)
        else:
            rows_m = TH - off              # output rows served by the strip block
            if rows_m > 0:
                xm = x_ref[0, off:TH, :, :]               # (rows_m, W_out, KWC)
                acc_ref[0:rows_m * W_out, :] += jnp.dot(
                    xm.reshape(rows_m * W_out, KWC), wk,
                    preferred_element_type=jnp.float32)
            xh = h_ref[0, 0:off, :, :]                    # (off, W_out, KWC)
            acc_ref[rows_m * W_out:HW, :] += jnp.dot(
                xh.reshape(off * W_out, KWC), wk,
                preferred_element_type=jnp.float32)

    # One XLU transpose so the store is lane-dense along TH*W_out (>= 128 by
    # construction) and the result is directly NCHW-ordered; only the live
    # C_out rows are written (zero-padded weight columns never stored).
    o_ref[0, :, :] = acc_ref[...].T[:C_out, :].astype(o_ref.dtype)


# ----------------------------------------------------------------------------
# PaddedConv2d forward
# ----------------------------------------------------------------------------
def padded_conv2d(x, weight, *, stride=1, dilation=1,
                  compute_dtype=jnp.bfloat16, out_dtype=jnp.float32):
    """x: (N, C_in, H, W) NCHW.  weight: (C_out, C_in, KH, KW).  bias=False.

    Matches:
        pd = kernel_size[0] // 2 * dilation        # the PyTorch module uses KH
        x = F.pad(x, (pd, pd, pd, pd), mode='reflect')
        y = Conv2d(..., stride=stride, padding=0, dilation=dilation)(x)
    """
    N, C_in, H, W = x.shape
    C_out, C_in_w, KH, KW = weight.shape
    assert C_in == C_in_w

    pd = (KH // 2) * dilation                 # same pad on H and W, as in spec
    assert pd < H and pd < W, "reflect padding requires pad < spatial extent"

    # TODO(synk): fuse the reflect padding into the kernel DMA (replicated halo
    # rows / element offsets) to save this HBM round trip; matters most on v5e.
    x_pad = jnp.pad(x, ((0, 0), (0, 0), (pd, pd), (pd, pd)), mode="reflect")
    Hp, Wp = H + 2 * pd, W + 2 * pd
    x_nhwc = jnp.transpose(x_pad, (0, 2, 3, 1))            # (N, Hp, Wp, C_in)

    # Output extents.  H is computed dense (stride-1) in the kernel and
    # subsampled below; the W-stride is folded into the packing (no W waste).
    W_out = (Wp - dilation * (KW - 1) - 1) // stride + 1
    H1 = Hp - dilation * (KH - 1)                          # dense H rows

    # Fold KW (and the W-stride) into the channel dim.  Only KWx extra HBM read
    # versus the KH*KWx of a full im2col.
    # TODO(synk): for very small C_in (KW*C_in << 128) a W-to-lanes layout would
    # fill vreg lanes better; for W_out not a multiple of 8 the in-kernel
    # reshape may trigger a relayout (pad W_out to 8 in the wrapper to avoid).
    cols = [
        x_nhwc[:, :, kw * dilation:kw * dilation + (W_out - 1) * stride + 1:stride, :]
        for kw in range(KW)
    ]
    x_packed = jnp.concatenate(cols, axis=-1).astype(compute_dtype)  # (N,Hp,W_out,KW*C_in)
    KWC = KW * C_in

    # Weight -> (KH, KW*C_in, C_out_p), kw-major / c-minor to match x_packed;
    # C_out zero-padded to a lane multiple of 128 (tiny, stays VMEM-resident).
    C_out_p = _round_up(C_out, 128)
    w_fold = jnp.transpose(weight, (2, 3, 1, 0)).reshape(KH, KWC, C_out)
    if C_out_p != C_out:
        w_fold = jnp.pad(w_fold, ((0, 0), (0, 0), (0, C_out_p - C_out)))
    w_fold = w_fold.astype(compute_dtype)

    # H-strip tiling: bounds per-step VMEM, creates pipeline steps and 2-TC work.
    halo = dilation * (KH - 1)
    TH = _pick_strip_rows(H1, W_out, halo)
    use_halo = TH is not None
    if not use_halo:
        TH = H1                          # single whole-image block per batch elem
    n_strips = H1 // TH
    main_rows = TH if use_halo else Hp

    kernel = functools.partial(
        _conv_strip_kernel,
        KH=KH, dilation=dilation, TH=TH, W_out=W_out, C_out=C_out,
        use_halo=use_halo)

    if use_halo:
        halo_blocks_per_strip = TH // halo
        in_specs = [
            pl.BlockSpec((1, TH, W_out, KWC), lambda n, s: (n, s, 0, 0)),
            pl.BlockSpec((1, halo, W_out, KWC),
                         lambda n, s: (n, (s + 1) * halo_blocks_per_strip, 0, 0)),
        ]
        operands = (x_packed, x_packed)
    else:
        in_specs = [pl.BlockSpec((1, Hp, W_out, KWC), lambda n, s: (n, 0, 0, 0))]
        operands = (x_packed,)
    # Constant index map: weight DMA'd once, stays VMEM-resident.
    in_specs.append(pl.BlockSpec((KH, KWC, C_out_p), lambda n, s: (0, 0, 0)))
    operands = operands + (w_fold,)

    out_spec = pl.BlockSpec((1, C_out, TH * W_out), lambda n, s: (n, 0, s))

    out_itemsize = jnp.dtype(out_dtype).itemsize
    flops = 2 * N * H1 * W_out * KH * KWC * C_out_p
    bytes_accessed = int(
        x_packed.size * x_packed.dtype.itemsize
        + (N * n_strips * halo * W_out * KWC * 2 if use_halo else 0)
        + w_fold.size * w_fold.dtype.itemsize
        + N * C_out * H1 * W_out * out_itemsize)

    # Explicit scoped-VMEM budget (defaults are 16/32 MiB on v5e/v6e,v7x).
    est = (2 * _vmem_block_bytes((1, main_rows, W_out, KWC), 2)
           + (2 * _vmem_block_bytes((1, halo, W_out, KWC), 2) if use_halo else 0)
           + 2 * _vmem_block_bytes((KH, KWC, C_out_p), 2)
           + 2 * _vmem_block_bytes((1, C_out, TH * W_out), out_itemsize)
           + _vmem_block_bytes((TH * W_out, C_out_p), 4))
    vmem_limit = int(min(64 << 20, max(32 << 20, 2 * est)))

    y = pl.pallas_call(
        kernel,
        out_shape=jax.ShapeDtypeStruct((N, C_out, H1 * W_out), out_dtype),
        grid_spec=pltpu.PrefetchScalarGridSpec(
            num_scalar_prefetch=0,
            grid=(N, n_strips),
            in_specs=in_specs,
            out_specs=out_spec,
            scratch_shapes=[pltpu.VMEM((TH * W_out, C_out_p), jnp.float32)],
        ),
        compiler_params=pltpu.CompilerParams(
            dimension_semantics=("parallel", "parallel"),
            vmem_limit_bytes=vmem_limit,
        ),
        cost_estimate=pl.CostEstimate(
            flops=int(flops), transcendentals=0, bytes_accessed=bytes_accessed),
    )(*operands)

    y = y.reshape(N, C_out, H1, W_out)        # free: already NCHW-ordered
    if stride != 1:
        # TODO(synk): subsample H inside the kernel (strided row window) to also
        # skip the stride-x redundant H-row compute; W-stride is already folded.
        y = y[:, :, ::stride, :]
    return y


# ----------------------------------------------------------------------------
# Demo / self-check
# ----------------------------------------------------------------------------
def _reference(x, weight, stride, dilation):
    KH = weight.shape[2]
    pd = (KH // 2) * dilation
    x_pad = jnp.pad(x, ((0, 0), (0, 0), (pd, pd), (pd, pd)), mode="reflect")
    # Inputs rounded to bf16 to match the kernel's bf16 MXU operands (both
    # accumulate in f32).
    x_r = x_pad.astype(jnp.bfloat16).astype(jnp.float32)
    w_r = weight.astype(jnp.bfloat16).astype(jnp.float32)
    return jax.lax.conv_general_dilated(
        x_r, w_r,
        window_strides=(stride, stride),
        padding="VALID",
        rhs_dilation=(dilation, dilation),
        dimension_numbers=("NCHW", "OIHW", "NCHW"),
        precision=jax.lax.Precision.HIGHEST,
    )


if __name__ == "__main__":
    key = jax.random.PRNGKey(0)
    configs = [
        # (N, C_in, H, W, C_out, k, stride, dilation)
        (2, 4, 16, 16, 8, 3, 1, 1),   # multi-strip path with halo blocks
        (1, 3, 8, 8, 5, 3, 1, 2),     # whole-image fallback path, dilation=2
        (1, 4, 16, 16, 8, 3, 2, 1),   # stride=2 (W-stride folded in wrapper)
    ]
    for idx, (N, C_in, H, W, C_out, k, s, d) in enumerate(configs):
        key, k_x, k_w = jax.random.split(key, 3)
        x = jax.random.normal(k_x, (N, C_in, H, W), dtype=jnp.float32)
        fan_in = C_in * k * k
        weight = jax.random.normal(k_w, (C_out, C_in, k, k), dtype=jnp.float32)
        weight = weight * (1.0 / jnp.sqrt(fan_in))

        y = padded_conv2d(x, weight, stride=s, dilation=d)
        y = jax.block_until_ready(y)

        y_ref = _reference(x, weight, s, d)
        assert y.shape == y_ref.shape, (idx, y.shape, y_ref.shape)
        max_err = float(jnp.max(jnp.abs(y - y_ref)))
        assert jnp.allclose(y, y_ref, atol=2e-3, rtol=2e-3), (idx, max_err)

    print("KERNEL_OK")
</pallas_src>

<mosaic_0001>
module attributes {stable_mosaic.version = 11 : i64} {
  func.func @_conv_strip_kernel(%arg0: i32, %arg1: i32, %arg2: memref<1x8x16x12xbf16, #tpu.memory_space<vmem>>, %arg3: memref<1x2x16x12xbf16, #tpu.memory_space<vmem>>, %arg4: memref<3x12x128xbf16, #tpu.memory_space<vmem>>, %arg5: memref<1x8x128xf32, #tpu.memory_space<vmem>>, %arg6: memref<128x128xf32, #tpu.memory_space<vmem>>) attributes {dimension_semantics = [#tpu.dimension_semantics<parallel>, #tpu.dimension_semantics<parallel>], iteration_bounds = array<i64: 2, 2>, scalar_prefetch = 0 : i64, scratch_operands = 1 : i64, tpu.core_type = #tpu.core_type<tc>, window_params = [{transform_indices = @transform_0, window_bounds = array<i64: 1, 8, 16, 12>}, {transform_indices = @transform_1, window_bounds = array<i64: 1, 2, 16, 12>}, {pipeline_mode = #tpu.pipeline_mode<synchronous>, transform_indices = @transform_2, window_bounds = array<i64: 3, 12, 128>}, {transform_indices = @transform_3, window_bounds = array<i64: 1, 8, 128>}]} {
    %c0 = arith.constant 0 : index
    %c0_0 = arith.constant 0 : index
    %c0_1 = arith.constant 0 : index
    %0 = vector.load %arg4[%c0, %c0_0, %c0_1] : memref<3x12x128xbf16, #tpu.memory_space<vmem>>, vector<1x12x128xbf16>
    %1 = vector.shape_cast %0 : vector<1x12x128xbf16> to vector<12x128xbf16>
    %c0_2 = arith.constant 0 : index
    %c0_3 = arith.constant 0 : index
    %c0_4 = arith.constant 0 : index
    %c0_5 = arith.constant 0 : index
    %2 = vector.load %arg2[%c0_2, %c0_3, %c0_4, %c0_5] : memref<1x8x16x12xbf16, #tpu.memory_space<vmem>>, vector<1x8x16x12xbf16>
    %3 = vector.shape_cast %2 : vector<1x8x16x12xbf16> to vector<8x16x12xbf16>
    %4 = vector.shape_cast %3 : vector<8x16x12xbf16> to vector<128x12xbf16>
    %cst = arith.constant dense<0.000000e+00> : vector<128x128xf32>
    %5 = tpu.matmul %4, %1, %cst {dimension_numbers = #tpu.dot_dimension_numbers<[1], [0], [0], [1], [0, 0, 1, 1], [], []>} : vector<128x12xbf16>, vector<12x128xbf16>, vector<128x128xf32> -> vector<128x128xf32>
    %c0_6 = arith.constant 0 : index
    %c0_7 = arith.constant 0 : index
    %6 = vector.load %arg6[%c0_6, %c0_7] : memref<128x128xf32, #tpu.memory_space<vmem>>, vector<128x128xf32>
    tpu.vector_store %arg6[%c0_6, %c0_7], %5 {strides = array<i32>} : memref<128x128xf32, #tpu.memory_space<vmem>>, vector<128x128xf32>,
    %c1 = arith.constant 1 : index
    %c0_8 = arith.constant 0 : index
    %c0_9 = arith.constant 0 : index
    %7 = vector.load %arg4[%c1, %c0_8, %c0_9] : memref<3x12x128xbf16, #tpu.memory_space<vmem>>, vector<1x12x128xbf16>
    %8 = vector.shape_cast %7 : vector<1x12x128xbf16> to vector<12x128xbf16>
    %c0_10 = arith.constant 0 : index
    %c1_11 = arith.constant 1 : index
    %c0_12 = arith.constant 0 : index
    %c0_13 = arith.constant 0 : index
    %9 = vector.load %arg2[%c0_10, %c1_11, %c0_12, %c0_13] : memref<1x8x16x12xbf16, #tpu.memory_space<vmem>>, vector<1x7x16x12xbf16>
    %10 = vector.shape_cast %9 : vector<1x7x16x12xbf16> to vector<7x16x12xbf16>
    %c0_14 = arith.constant 0 : index
    %c0_15 = arith.constant 0 : index
    %11 = vector.load %arg6[%c0_14, %c0_15] : memref<128x128xf32, #tpu.memory_space<vmem>>, vector<112x128xf32>
    %12 = vector.shape_cast %10 : vector<7x16x12xbf16> to vector<112x12xbf16>
    %cst_16 = arith.constant dense<0.000000e+00> : vector<112x128xf32>
    %13 = tpu.matmul %12, %8, %cst_16 {dimension_numbers = #tpu.dot_dimension_numbers<[1], [0], [0], [1], [0, 0, 1, 1], [], []>} : vector<112x12xbf16>, vector<12x128xbf16>, vector<112x128xf32> -> vector<112x128xf32>
    %14 = arith.addf %11, %13 : vector<112x128xf32>
    %c0_17 = arith.constant 0 : index
    %c0_18 = arith.constant 0 : index
    %15 = vector.load %arg6[%c0_17, %c0_18] : memref<128x128xf32, #tpu.memory_space<vmem>>, vector<112x128xf32>
    tpu.vector_store %arg6[%c0_17, %c0_18], %14 {strides = array<i32>} : memref<128x128xf32, #tpu.memory_space<vmem>>, vector<112x128xf32>,
    %c0_19 = arith.constant 0 : index
    %c0_20 = arith.constant 0 : index
    %c0_21 = arith.constant 0 : index
    %c0_22 = arith.constant 0 : index
    %16 = vector.load %arg3[%c0_19, %c0_20, %c0_21, %c0_22] : memref<1x2x16x12xbf16, #tpu.memory_space<vmem>>, vector<1x1x16x12xbf16>
    %17 = vector.shape_cast %16 : vector<1x1x16x12xbf16> to vector<1x16x12xbf16>
    %c112 = arith.constant 112 : index
    %c0_23 = arith.constant 0 : index
    %18 = vector.load %arg6[%c112, %c0_23] : memref<128x128xf32, #tpu.memory_space<vmem>>, vector<16x128xf32>
    %19 = vector.shape_cast %17 : vector<1x16x12xbf16> to vector<16x12xbf16>
    %cst_24 = arith.constant dense<0.000000e+00> : vector<16x128xf32>
    %20 = tpu.matmul %19, %8, %cst_24 {dimension_numbers = #tpu.dot_dimension_numbers<[1], [0], [0], [1], [0, 0, 1, 1], [], []>} : vector<16x12xbf16>, vector<12x128xbf16>, vector<16x128xf32> -> vector<16x128xf32>
    %21 = arith.addf %18, %20 : vector<16x128xf32>
    %c112_25 = arith.constant 112 : index
    %c0_26 = arith.constant 0 : index
    %22 = vector.load %arg6[%c112_25, %c0_26] : memref<128x128xf32, #tpu.memory_space<vmem>>, vector<16x128xf32>
    tpu.vector_store %arg6[%c112_25, %c0_26], %21 {strides = array<i32>} : memref<128x128xf32, #tpu.memory_space<vmem>>, vector<16x128xf32>,
    %c2 = arith.constant 2 : index
    %c0_27 = arith.constant 0 : index
    %c0_28 = arith.constant 0 : index
    %23 = vector.load %arg4[%c2, %c0_27, %c0_28] : memref<3x12x128xbf16, #tpu.memory_space<vmem>>, vector<1x12x128xbf16>
    %24 = vector.shape_cast %23 : vector<1x12x128xbf16> to vector<12x128xbf16>
    %c0_29 = arith.constant 0 : index
    %c2_30 = arith.constant 2 : index
    %c0_31 = arith.constant 0 : index
    %c0_32 = arith.constant 0 : index
    %25 = vector.load %arg2[%c0_29, %c2_30, %c0_31, %c0_32] : memref<1x8x16x12xbf16, #tpu.memory_space<vmem>>, vector<1x6x16x12xbf16>
    %26 = vector.shape_cast %25 : vector<1x6x16x12xbf16> to vector<6x16x12xbf16>
    %c0_33 = arith.constant 0 : index
    %c0_34 = arith.constant 0 : index
    %27 = vector.load %arg6[%c0_33, %c0_34] : memref<128x128xf32, #tpu.memory_space<vmem>>, vector<96x128xf32>
    %28 = vector.shape_cast %26 : vector<6x16x12xbf16> to vector<96x12xbf16>
    %cst_35 = arith.constant dense<0.000000e+00> : vector<96x128xf32>
    %29 = tpu.matmul %28, %24, %cst_35 {dimension_numbers = #tpu.dot_dimension_numbers<[1], [0], [0], [1], [0, 0, 1, 1], [], []>} : vector<96x12xbf16>, vector<12x128xbf16>, vector<96x128xf32> -> vector<96x128xf32>
    %30 = arith.addf %27, %29 : vector<96x128xf32>
    %c0_36 = arith.constant 0 : index
    %c0_37 = arith.constant 0 : index
    %31 = vector.load %arg6[%c0_36, %c0_37] : memref<128x128xf32, #tpu.memory_space<vmem>>, vector<96x128xf32>
    tpu.vector_store %arg6[%c0_36, %c0_37], %30 {strides = array<i32>} : memref<128x128xf32, #tpu.memory_space<vmem>>, vector<96x128xf32>,
    %c0_38 = arith.constant 0 : index
    %c0_39 = arith.constant 0 : index
    %c0_40 = arith.constant 0 : index
    %c0_41 = arith.constant 0 : index
    %32 = vector.load %arg3[%c0_38, %c0_39, %c0_40, %c0_41] : memref<1x2x16x12xbf16, #tpu.memory_space<vmem>>, vector<1x2x16x12xbf16>
    %33 = vector.shape_cast %32 : vector<1x2x16x12xbf16> to vector<2x16x12xbf16>
    %c96 = arith.constant 96 : index
    %c0_42 = arith.constant 0 : index
    %34 = vector.load %arg6[%c96, %c0_42] : memref<128x128xf32, #tpu.memory_space<vmem>>, vector<32x128xf32>
    %35 = vector.shape_cast %33 : vector<2x16x12xbf16> to vector<32x12xbf16>
    %cst_43 = arith.constant dense<0.000000e+00> : vector<32x128xf32>
    %36 = tpu.matmul %35, %24, %cst_43 {dimension_numbers = #tpu.dot_dimension_numbers<[1], [0], [0], [1], [0, 0, 1, 1], [], []>} : vector<32x12xbf16>, vector<12x128xbf16>, vector<32x128xf32> -> vector<32x128xf32>
    %37 = arith.addf %34, %36 : vector<32x128xf32>
    %c96_44 = arith.constant 96 : index
    %c0_45 = arith.constant 0 : index
    %38 = vector.load %arg6[%c96_44, %c0_45] : memref<128x128xf32, #tpu.memory_space<vmem>>, vector<32x128xf32>
    tpu.vector_store %arg6[%c96_44, %c0_45], %37 {strides = array<i32>} : memref<128x128xf32, #tpu.memory_space<vmem>>, vector<32x128xf32>,
    %c0_46 = arith.constant 0 : index
    %c0_47 = arith.constant 0 : index
    %39 = vector.load %arg6[%c0_46, %c0_47] : memref<128x128xf32, #tpu.memory_space<vmem>>, vector<128x128xf32>
    %40 = tpu.transpose %39, [1, 0] : vector<128x128xf32> -> vector<128x128xf32>
    %41 = vector.extract_strided_slice %40 {offsets = [0, 0], sizes = [8, 128], strides = [1, 1]} : vector<128x128xf32> to vector<8x128xf32>
    %c0_48 = arith.constant 0 : index
    %c0_49 = arith.constant 0 : index
    %c0_50 = arith.constant 0 : index
    %42 = vector.load %arg5[%c0_48, %c0_49, %c0_50] : memref<1x8x128xf32, #tpu.memory_space<vmem>>, vector<1x8x128xf32>
    %43 = vector.shape_cast %42 : vector<1x8x128xf32> to vector<8x128xf32>
    %44 = vector.shape_cast %41 : vector<8x128xf32> to vector<1x8x128xf32>
    tpu.vector_store %arg5[%c0_48, %c0_49, %c0_50], %44 {strides = array<i32>} : memref<1x8x128xf32, #tpu.memory_space<vmem>>, vector<1x8x128xf32>,
    return
  }
  func.func @transform_0(%arg0: i32, %arg1: i32) -> (i32, i32, i32, i32) {
    %c0_i32 = arith.constant 0 : i32
    %c0_i32_0 = arith.constant 0 : i32
    %c0_i32_1 = arith.constant 0 : i32
    return %arg0, %arg1, %c0_i32, %c0_i32_0 : i32, i32, i32, i32
  }
  func.func @transform_1(%arg0: i32, %arg1: i32) -> (i32, i32, i32, i32) {
    %c1_i32 = arith.constant 1 : i32
    %0 = arith.addi %arg1, %c1_i32 : i32
    %c4_i32 = arith.constant 4 : i32
    %1 = arith.muli %0, %c4_i32 : i32
    %c0_i32 = arith.constant 0 : i32
    %c0_i32_0 = arith.constant 0 : i32
    %c0_i32_1 = arith.constant 0 : i32
    return %arg0, %1, %c0_i32, %c0_i32_0 : i32, i32, i32, i32
  }
  func.func @transform_2(%arg0: i32, %arg1: i32) -> (i32, i32, i32) {
    %c0_i32 = arith.constant 0 : i32
    %c0_i32_0 = arith.constant 0 : i32
    %c0_i32_1 = arith.constant 0 : i32
    %c0_i32_2 = arith.constant 0 : i32
    return %c0_i32, %c0_i32_0, %c0_i32_1 : i32, i32, i32
  }
  func.func @transform_3(%arg0: i32, %arg1: i32) -> (i32, i32, i32) {
    %c0_i32 = arith.constant 0 : i32
    %c0_i32_0 = arith.constant 0 : i32
    return %arg0, %c0_i32, %arg1 : i32, i32, i32
  }
}

</mosaic_0001>

<bundles_post_ra>
// kernel: tpu_custom_call.1
= control target key start
LH: loop header
LB: loop body
LE: loop exit
PB: predicated region body
PF: predicated region fallthrough
CT: control target
= control target key end

     0   :  { %8 = vsyncpa [#allocation4], 0  ;;  %s1877_s0 = inlined_call_operand.vmem [shape: bf16[2,18,16,12], index: 0, kind: input, shape index: {}]   ;;  %s1878_s1 = inlined_call_operand.vmem [shape: bf16[2,18,16,12], index: 1, kind: input, shape index: {}]   ;;  %s1879_s2 = inlined_call_operand.vmem [shape: bf16[3,12,128], index: 2, kind: input, shape index: {}]   ;;  %s1880_s3 = inlined_call_operand.hbm [shape: f32[2,8,256], index: 3, kind: output, shape index: {}]  }
   0x1   :  { %10 = vsyncpa [#allocation4 + $0x1], 0  ;;  %s1627_s12 = smov 0   ;;  %s1629_s13 = smov 0  }
   0x2   :  { %s1631_s14 = smov 0   ;;  %s1633_s15 = smov 0  }
   0x3   :  { %s1635_s16 = smov 0   ;;  %s1637_s17 = smov 0  }
   0x4   :  { %s1639_s18 = smov 0   ;;  %s1641_s19 = smov 0  }
   0x5 LB: > { %s1193_s20 = sadd.s32 4294967295, %s1602_s19   ;;  %s1194_s21 = sadd.s32 4294967294, %s1602_s19   ;;  %s1602_s19 = sphi %s1641_s19, %s16_s19   ;;  %s1598_s18 = sphi %s1639_s18, %s1889_s18   ;;  %s1594_s17 = sphi %s1637_s17, %s1888_s17   ;;  %s1590_s16 = sphi %s1635_s16, %s1887_s16   ;;  %s1586_s15 = sphi %s1633_s15, %s1886_s15   ;;  %s1582_s14 = sphi %s1631_s14, %s1885_s14   ;;  %s1578_s13 = sphi %s1629_s13, %s1884_s13   ;;  %s1574_s12 = sphi %s1627_s12, %s1883_s12  }
   0x6   : > { %s25_s22 = sadd.s32 1, %s1594_s17  ;;  %s28_s23 = sadd.s32 1, %s1598_s18 }
   0x7   : > { %p26_p0 = scmp.ge.s32.totalorder %s25_s22, 2  ;;  %p128_p1 = scmp.ne.s32.totalorder %s1582_s14, %s1578_s13 }
   0x8   : > { %p129_p2 = scmp.eq.s32.totalorder %s1193_s20, 3  ;;  %p134_p5 = scmp.ne.s32.totalorder %s1578_s13, %s1574_s12 }
   0x9   : > { %s1891_s22 = smov (%p26_p0, %s25_s22), 0  ;;  %s1893_s23 = smov (!%p26_p0, %s28_s23), %s1598_s18 }
   0xa   : > { %s114_s24 = ssub.s32 %s1594_s17, %s1891_s22  ;;  %p1678_p3 = por %p129_p2, %p128_p1 }
   0xb   : > { %p30_p4 = scmp.ge.s32.totalorder %s1893_s23, 2  ;;  %p135_p6 = scmp.eq.s32.totalorder %s1194_s21, 3 }
   0xc   : > { %p1199_p7 = scmp.ge.s32.totalorder %s1602_s19, 1  ;;  %p198_p9 = scmp.lt.s32.totalorder %s1602_s19, 5 }
   0xd   : > { %s1895_s23 = smov (%p30_p4, %s1893_s23), 0  ;;  %p1687_p8 = por %p135_p6, %p134_p5 }
   0xe   : > { %s113_s27 = ssub.s32 %s1598_s18, %s1895_s23  ;;  %s118_s28 = sadd.s32 1, %s1582_s14 }
   0xf   : > { %s115_s29 = sor.u32 %s114_s24, %s113_s27  ;;  %p199_p10 = pnand %p1199_p7, %p198_p9 }
  0x10   : > { %p116_p11 = scmp.eq.s32.totalorder %s115_s29, 0  ;;  %s1201_s8 = sshll.u32 (!%p199_p10), %s1586_s15, 3 }
  0x11   : > { %202 = sbr.rel (%p199_p10) target bundleno = 407 (0x197), region = 32  ;;  %p250_p12 = scmp.lt.s32.totalorder (!%p199_p10), %s1590_s16, 1 }
  0x12   : > { %s1696_s30 = scalar_select %p116_p11, %s1582_s14, %s118_s28  }
  0x13   : > { %p252_p13 = scmp.lt.s32.totalorder (!%p199_p10), %s1201_s8, 17  ;;  %s1302_s24 = sadd.s32 (!%p199_p10), 8, %s1201_s8 }
  0x14   : > { %p270_p0 = scmp.lt.s32.totalorder (!%p199_p10), %s1302_s24, 17 }
  0x16   : > { %v1483_v0 = vld [vmem:[%s1879_s2] sm:$0x3f]   ;;  %vm369_vm0 = vcmask 1045504   ;;  %v1604_v1 = vmov 0.0   ;;  %v1484_v3 = vld [vmem:[%s1879_s2 + $0x8] sm:$0x3f]  }
  0x17   : > { %1406 = vmatprep.subr.msk.bf16.mxu0 %vm369_vm0, %v1483_v0  ;;  %1350 = vmatprep.subr.bf16.mxu1 %v1604_v1  ;;  %v371_v2 = vsel %vm369_vm0, %v1483_v0, 0  ;;  %vm1605_vm1 = vmmov 0   ;;  %v580_v4 = vsel %vm369_vm0, %v1484_v3, 0  ;;  %s1713_s9 = scalar_select %p250_p12, %s1590_s16, 1  ;;  %v1498_v5 = vld [vmem:[%s1879_s2 + $0x10] sm:$0x3f]  }
  0x18   : > { %1333 = vmatpush3.bf16.msra.mxu0 %v371_v2  ;;  %1352 = vmatprep.mubr.msk.bf16.mxu1 %vm1605_vm1, %v1604_v1  ;;  %s253_s20 = scalar_select %p252_p13, %s1201_s8, 17  ;;  %vm344_vm2 = vcmask 97280   ;;  %v838_v10 = vsel %vm369_vm0, %v1498_v5, 0 }
  0x19   : > { %1380 = vmatprep.subr.bf16.mxu0 %v1604_v1  ;;  %1351 = vmatpush3.bf16.msra.mxu1 %v580_v4  ;;  %s1409_s21 = smul.u32 36, %s1713_s9  ;;  %s1897_s24 = smov (!%p270_p0, %s1302_s24), 17 }
  0x1a   : > { %1408 = vmatprep.subr.msk.bf16.mxu1 %vm369_vm0, %v1498_v5  ;;  %s1202_s27 = sshll.u32 %s253_s20, 1  ;;  %s1206_s7 = sshll.u32 %s1897_s24, 1 }
  0x1b   : > { %s256_s28 = sadd.s32 %s1409_s21, %s1202_s27  ;;  %s274_s8 = sadd.s32 %s1409_s21, %s1206_s7 }
  0x1c   : > { %s1203_s29 = sshll.u32 %s256_s28, 2  ;;  %s1207_s9 = sshll.u32 %s274_s8, 2 }
  0x1d   : > { %s1724_s6 = scalar_lea.vmem %s1877_s0, %s1203_s29  ;;  %s1748_s20 = scalar_lea.vmem %s1878_s1, %s1207_s9 }
  0x1e   : > { %v1485_v6 = vld [vmem:[%s1724_s6] sm:$0xff]   ;;  %v1486_v7 = vld [vmem:[%s1724_s6 + $0x8] sm:$0xff]   ;;  %v1488_v9 = vld [vmem:[%s1724_s6 + $0x10] sm:$0xff]   ;;  %s241_s21 = sand.u32 1, %s1578_s13   ;;  %s1290_s27 = sshll.u32 %s1590_s16, 1 }
  0x1f   : > { %1334 = vmatprep.mubr.msk.bf16.mxu0 %vm344_vm2, %v1485_v6  ;;  %v1487_v8 = vld [vmem:[%s1724_s6 + $0x8] sm:$0xff]   ;;  %1353 = vmatmul.mubr.msk.bf16.vlgmr.msra.gmra.mxu1 %vm344_vm2, %v1486_v7  ;;  %v1489_v11 = vld [vmem:[%s1724_s6 + $0x10] sm:$0xff]   ;;  %v1490_v12 = vld [vmem:[%s1724_s6 + $0x18] sm:$0xff]   ;;  %s1200_s24 = sshll.u32 %s241_s21, 3  ;;  %s1087_s28 = sadd.s32 %s1586_s15, %s1290_s27 }
  0x20   : > { %1335 = vmatmul.mubr.msk.bf16.vlgmr.msra.gmra.mxu0 %vm344_vm2, %v1487_v8  ;;  %1356 = vmatprep.mubr.msk.bf16.mxu1 %vm1605_vm1, %v1604_v1  ;;  %v1491_v13 = vld [vmem:[%s1724_s6 + $0x20] sm:$0xff]   ;;  %v1492_v14 = vld [vmem:[%s1724_s6 + $0x18] sm:$0xff]   ;;  %v1493_v15 = vld [vmem:[%s1724_s6 + $0x28] sm:$0xff]   ;;  %s243_s29 = scalar_lea.vmem [#allocation3], %s1200_s24  ;;  %s1291_s5 = sshll.u32 %s1087_s28, 7 }
  0x21   : > { %1381 = vmatpush3.bf16.msra.mxu0 %v580_v4  ;;  %1338 = vmatprep.mubr.msk.bf16.mxu0 %vm344_vm2, %v1488_v9  ;;  %v1494_v16 = vld [vmem:[%s1724_s6 + $0x30] sm:$0xff]   ;;  %v1495_v17 = vld [vmem:[%s1724_s6 + $0x20] sm:$0xff]   ;;  %v1496_v18 = vld [vmem:[%s1724_s6 + $0x38] sm:$0xff]   ;;  %s1091_s4 = sshll.u32 %s243_s29, 4  ;;  %s1089_s8 = scalar_lea.hbm %s1880_s3, %s1291_s5  ;;  %s1828_s4 = int_to_ptr.vmem [resolvable:$true] %s1091_s4 }
  0x22   : > { %1407 = vmatprep.subr.msk.bf16.mxu0 %vm369_vm0, %v1498_v5  ;;  %1401 = vmatpush3.bf16.msra.mxu1 %v838_v10  ;;  %v1497_v19 = vld [vmem:[%s1724_s6 + $0x28] sm:$0xff]   ;;  %v1499_v20 = vld [vmem:[%s1748_s20] sm:$0xff]   ;;  %v1501_v21 = vld [vmem:[%s1724_s6 + $0x10] sm:$0xff]   ;;  %s1076_s9 = scalar_lea.sflag [#allocation4], %s241_s21  ;;  %s1510_s10 = scalar_lea.vmem %s1828_s4, 128 }
  0x23   : > { %v1500_v22 = vld [vmem:[%s1724_s6 + $0x30] sm:$0xff]   ;;  %v1502_v23 = vld [vmem:[%s1724_s6 + $0x18] sm:$0xff]   ;;  %v1504_v24 = vld [vmem:[%s1724_s6 + $0x20] sm:$0xff]   ;;  %p1511_p1 = scmp.ne.s32.totalorder %s1828_s4, %s1510_s10  ;;  %s1606_s15 = smov [#allocation3]  }
  0x24   : > { %v1503_v25 = vld [vmem:[%s1724_s6 + $0x38] sm:$0xff]   ;;  %v1505_v26 = vld [vmem:[%s1724_s6 + $0x28] sm:$0xff]   ;;  %v1506_v27 = vld [vmem:[%s1748_s20] sm:$0xff]   ;;  %s1514_s16 = sshll.u32 %s1606_s15, 4  ;;  %s1515_s16 = int_to_ptr.vmem [resolvable:$false] %s1514_s16 }
  0x25   : > { %v1507_v28 = vld [vmem:[%s1724_s6 + $0x30] sm:$0xff]   ;;  %v1508_v29 = vld [vmem:[%s1748_s20 + $0x8] sm:$0xff]   ;;  %v1509_v30 = vld [vmem:[%s1724_s6 + $0x38] sm:$0xff]   ;;  %p1512_p2 = pnand %p1511_p1, %p1678_p3  ;;  %s1516_s11 = scalar_lea.vmem %s1515_s16, 256 }
  0x26   : > { %p1517_p5 = scmp.lt.s32.totalorder %s1828_s4, %s1515_s16  ;;  %p1518_p6 = scmp.lt.s32.totalorder %s1516_s11, %s1510_s10 }
  0x27   : > { %1357 = vmatmul.mubr.msk.bf16.gmra.mxu1 %vm344_vm2, %v1489_v11  ;;  %p1513_p4 = pneg %p1512_p2 }
  0x28   : > { %1339 = vmatmul.mubr.msk.bf16.gmra.mxu0 %vm344_vm2, %v1490_v12  ;;  %1360 = vmatprep.mubr.msk.bf16.mxu1 %vm1605_vm1, %v1604_v1  ;;  %p1519_p7 = por %p1518_p6, %p1517_p5 }
  0x29   : > { %1342 = vmatprep.mubr.msk.bf16.mxu0 %vm344_vm2, %v1491_v13 }
  0x2a   : > { %p1520_p9 = pnand %p1519_p7, %p1513_p4 }
  0x2f   : > { %1361 = vmatmul.mubr.msk.bf16.gmra.mxu1 %vm344_vm2, %v1492_v14 }
  0x30   : > { %1343 = vmatmul.mubr.msk.bf16.gmra.mxu0 %vm344_vm2, %v1493_v15  ;;  %1364 = vmatprep.mubr.msk.bf16.mxu1 %vm1605_vm1, %v1604_v1 }
  0x31   : > { %1346 = vmatprep.mubr.msk.bf16.mxu0 %vm344_vm2, %v1494_v16 }
  0x37   : > { %1365 = vmatmul.mubr.msk.bf16.gmra.mxu1 %vm344_vm2, %v1495_v17 }
  0x38   : > { %1347 = vmatmul.mubr.msk.bf16.gmra.mxu0 %vm344_vm2, %v1496_v18  ;;  %1368 = vmatprep.mubr.msk.bf16.mxu1 %vm1605_vm1, %v1604_v1 }
  0x39   : > { %1382 = vmatprep.mubr.msk.bf16.mxu0 %vm1605_vm1, %v1604_v1 }
  0x3f   : > { %1369 = vmatmul.mubr.msk.bf16.gmra.mxu1 %vm344_vm2, %v1497_v19 }
  0x40   : > { %1383 = vmatmul.mubr.msk.bf16.vlgmr.msra.gmra.mxu0 %vm344_vm2, %v1499_v20  ;;  %1372 = vmatprep.mubr.msk.bf16.mxu1 %vm1605_vm1, %v1604_v1 }
  0x41   : > { %1387 = vmatpush3.bf16.msra.mxu0 %v838_v10  ;;  %1388 = vmatprep.mubr.msk.bf16.mxu0 %vm344_vm2, %v1501_v21 }
  0x47   : > { %1373 = vmatmul.mubr.msk.bf16.gmra.mxu1 %vm344_vm2, %v1500_v22 }
  0x48   : > { %1389 = vmatmul.mubr.msk.bf16.vlgmr.msra.gmra.mxu0 %vm344_vm2, %v1502_v23  ;;  %1376 = vmatprep.mubr.msk.bf16.mxu1 %vm1605_vm1, %v1604_v1 }
  0x49   : > { %1392 = vmatprep.mubr.msk.bf16.mxu0 %vm344_vm2, %v1504_v24 }
  0x4f   : > { %1377 = vmatmul.mubr.msk.bf16.gmra.mxu1 %vm344_vm2, %v1503_v25 }
  0x50   : > { %1393 = vmatmul.mubr.msk.bf16.gmra.mxu0 %vm344_vm2, %v1505_v26  ;;  %1402 = vmatprep.mubr.msk.bf16.mxu1 %vm344_vm2, %v1506_v27 }
  0x51   : > { %1396 = vmatprep.mubr.msk.bf16.mxu0 %vm344_vm2, %v1507_v28 }
  0x57   : > { %1403 = vmatmul.mubr.msk.bf16.vlgmr.msra.gmra.mxu1 %vm344_vm2, %v1508_v29 }
  0x58   : > { %1397 = vmatmul.mubr.msk.bf16.gmra.mxu0 %vm344_vm2, %v1509_v30 }
  0xdf   : > { %v616_v31 = vpop.f32.mrf.mxu1 }
  0xe0   : > { %v1336_v32 = vpop.f32.mrf.mxu0 }
  0xe1   : > { %v1354_v33 = vpop.f32.mrf.mxu1 }
  0xe2   : > { %v407_v34 = vpop.f32.mrf.mxu0 }
  0xe3   : > { %v619_v35 = vpop.f32.mrf.mxu1  ;;  %v671_v11 = vadd.f32 %v616_v31, %v407_v34 }
  0xe4   : > { %v1337_v36 = vpop.f32.mrf.mxu0 }
  0xe5   : > { %v1355_v37 = vpop.f32.mrf.mxu1 }
  0xe6   : > { %v410_v38 = vpop.f32.mrf.mxu0 }
  0xe7   : > { %v624_v39 = vpop.f32.mrf.mxu1  ;;  %v672_v17 = vadd.f32 %v619_v35, %v410_v38 }
  0xe8   : > { %v1795_v40 = vpop.f32.mrf.mxu0  ;;  %v673_v23 = vadd.f32 %v1336_v32, %v624_v39 }
  0xe9   : > { %v1358_v41 = vpop.f32.mrf.mxu1 }
  0xea   : > { %v423_v42 = vpop.f32.mrf.mxu0 }
  0xeb   : > { %v627_v43 = vpop.f32.mrf.mxu1 }
  0xec   : > { %v1797_v44 = vpop.f32.mrf.mxu0  ;;  %v674_v28 = vadd.f32 %v1337_v36, %v627_v43 }
  0xed   : > { %v1359_v45 = vpop.f32.mrf.mxu1 }
  0xee   : > { %v426_v46 = vpop.f32.mrf.mxu0 }
  0xef   : > { %v632_v47 = vpop.f32.mrf.mxu1 }
  0xf0   : > { %v1799_v48 = vpop.f32.mrf.mxu0  ;;  %v675_v33 = vadd.f32 %v632_v47, %v423_v42 }
  0xf1   : > { %v1362_v49 = vpop.f32.mrf.mxu1 }
  0xf2   : > { %v1801_v50 = vpop.f32.mrf.mxu0 }
  0xf3   : > { %v635_v51 = vpop.f32.mrf.mxu1 }
  0xf4   : > { %v1803_v52 = vpop.f32.mrf.mxu0  ;;  %v676_v37 = vadd.f32 %v635_v51, %v426_v46 }
  0xf5   : > { %v1363_v53 = vpop.f32.mrf.mxu1 }
  0xf6   : > { %v1805_v54 = vpop.f32.mrf.mxu0 }
  0xf7   : > { %v640_v55 = vpop.f32.mrf.mxu1 }
  0xf8   : > { %v1348_v56 = vpop.f32.mrf.mxu0  ;;  %v677_v32 = vadd.f32 %v1795_v40, %v640_v55 }
  0xf9   : > { %v1366_v57 = vpop.f32.mrf.mxu1 }
  0xfa   : > { %v1807_v58 = vpop.f32.mrf.mxu0 }
  0xfb   : > { %v643_v59 = vpop.f32.mrf.mxu1 }
  0xfc   : > { %v1349_v60 = vpop.f32.mrf.mxu0  ;;  %v678_v49 = vadd.f32 %v1797_v44, %v643_v59 }
  0xfd   : > { %v1367_v61 = vpop.f32.mrf.mxu1 }
  0xfe   : > { %v1809_v62 = vpop.f32.mrf.mxu0 }
  0xff   : > { %v648_v63 = vpop.f32.mrf.mxu1 }
 0x100   : > { %v745_v0 = vpop.f32.mrf.mxu0  ;;  %v679_v53 = vadd.f32 %v648_v63, %v1801_v50 }
 0x101   : > { %v1811_v1 = vadd.f32 %v1348_v56, %v745_v0  ;;  %v1370_v2 = vpop.f32.mrf.mxu1 }
 0x102   : > { %v1384_v3 = vpop.f32.mrf.mxu0 }
 0x103   : > { %v651_v4 = vpop.f32.mrf.mxu1 }
 0x104   : > { %v748_v5 = vpop.f32.mrf.mxu0  ;;  %v680_v46 = vadd.f32 %v651_v4, %v1805_v54 }
 0x105   : > { %v1813_v6 = vadd.f32 %v1349_v60, %v748_v5  ;;  %v1371_v7 = vpop.f32.mrf.mxu1 }
 0x106   : > { %v1385_v8 = vpop.f32.mrf.mxu0 }
 0x107   : > { %v656_v9 = vpop.f32.mrf.mxu1 }
 0x108   : > { %v1390_v10 = vpop.f32.mrf.mxu0  ;;  %v681_v40 = vadd.f32 %v1799_v48, %v656_v9 }
 0x109   : > { %v1374_v12 = vpop.f32.mrf.mxu1  ;;  %v923_v25 = vadd.f32 %v1390_v10, %v673_v23 }
 0x10a   : > { %v874_v13 = vpop.f32.mrf.mxu0 }
 0x10b   : > { %v659_v14 = vpop.f32.mrf.mxu1  ;;  %v921_v15 = vadd.f32 %v874_v13, %v671_v11 }
 0x10c   : > { %v1391_v16 = vpop.f32.mrf.mxu0  ;;  %v682_v44 = vadd.f32 %v1803_v52, %v659_v14 }
 0x10d   : > { %v1375_v18 = vpop.f32.mrf.mxu1  ;;  %1042 = vxpose.xlu0.b32.start [1/16] (narrow) %v921_v15, 8  ;;  %v924_v30 = vadd.f32 %v1391_v16, %v674_v28 }
 0x10e   : > { %v877_v19 = vpop.f32.mrf.mxu0 }
 0x10f   : > { %v922_v20 = vadd.f32 %v877_v19, %v672_v17  ;;  %v664_v21 = vpop.f32.mrf.mxu1 }
 0x110   : > { %v1394_v22 = vpop.f32.mrf.mxu0  ;;  %v683_v60 = vadd.f32 %v664_v21, %v1807_v58 }
 0x111   : > { %v1378_v24 = vpop.f32.mrf.mxu1  ;;  %1043 = vxpose.xlu0.b32.cont [2/16] (narrow) %v922_v20, 8  ;;  %v927_v39 = vadd.f32 %v1394_v22, %v677_v32 }
 0x112   : > { %v890_v27 = vpop.f32.mrf.mxu0 }
 0x113   : > { %v667_v26 = vpop.f32.mrf.mxu1  ;;  %v925_v34 = vadd.f32 %v890_v27, %v675_v33 }
 0x114   : > { %v1395_v31 = vpop.f32.mrf.mxu0  ;;  %v684_v63 = vadd.f32 %v667_v26, %v1809_v62 }
 0x115   : > { %v1379_v29 = vpop.f32.mrf.mxu1  ;;  %1044 = vxpose.xlu0.b32.cont [3/16] (narrow) %v923_v25, 8  ;;  %v928_v36 = vadd.f32 %v1395_v31, %v678_v49 }
 0x116   : > { %v893_v35 = vpop.f32.mrf.mxu0 }
 0x117   : > { %v926_v38 = vadd.f32 %v893_v35, %v676_v37  ;;  %v1404_v56 = vpop.f32.mrf.mxu1 }
 0x118   : > { %v1398_v41 = vpop.f32.mrf.mxu0  ;;  %v1020_v0 = vadd.f32 %v1404_v56, %v1811_v1 }
 0x119   : > { %1045 = vxpose.xlu0.b32.cont [4/16] (narrow) %v924_v30, 8  ;;  %v931_v55 = vadd.f32 %v1398_v41, %v681_v40  ;;  %v1003_v57 = vpop.f32.mrf.mxu1 }
 0x11a   : > { %v906_v45 = vpop.f32.mrf.mxu0  ;;  %v1018_v54 = vadd.f32 %v1003_v57, %v683_v60 }
 0x11b   : > { %v929_v42 = vadd.f32 %v906_v45, %v679_v53  ;;  %v1405_v50 = vpop.f32.mrf.mxu1 }
 0x11c   : > { %v1399_v43 = vpop.f32.mrf.mxu0  ;;  %v1021_v52 = vadd.f32 %v1405_v50, %v1813_v6 }
 0x11d   : > { %1046 = vxpose.xlu0.b32.cont [5/16] (narrow) %v925_v34, 8  ;;  %v932_v59 = vadd.f32 %v1399_v43, %v682_v44  ;;  %v1006_v61 = vpop.f32.mrf.mxu1 }
 0x11e   : > { %v909_v47 = vpop.f32.mrf.mxu0  ;;  %v1019_v48 = vadd.f32 %v1006_v61, %v684_v63 }
 0x11f   : > { %v930_v51 = vadd.f32 %v909_v47, %v680_v46 }
 0x121   : > { %1047 = vxpose.xlu0.b32.cont [6/16] (narrow) %v926_v38, 8 }
 0x125   : > { %1048 = vxpose.xlu0.b32.cont [7/16] (narrow) %v927_v39, 8 }
 0x129   : > { %1049 = vxpose.xlu0.b32.cont [8/16] (narrow) %v928_v36, 8 }
 0x12d   : > { %1050 = vxpose.xlu0.b32.cont [9/16] (narrow) %v929_v42, 8 }
 0x131   : > { %1051 = vxpose.xlu0.b32.cont [10/16] (narrow) %v930_v51, 8 }
 0x135   : > { %1052 = vxpose.xlu0.b32.cont [11/16] (narrow) %v931_v55, 8 }
 0x139   : > { %1053 = vxpose.xlu0.b32.cont [12/16] (narrow) %v932_v59, 8 }
 0x13d   : > { %1054 = vxpose.xlu0.b32.cont [13/16] (narrow) %v1018_v54, 8 }
 0x141   : > { %1055 = vxpose.xlu0.b32.cont [14/16] (narrow) %v1019_v48, 8 }
 0x145   : > { %1056 = vxpose.xlu0.b32.cont [15/16] (narrow) %v1020_v0, 8 }
 0x149   : > { %1057 = vxpose.xlu0.b32.end [16/16] (narrow) %v1021_v52, 8 }
 0x189   : > { %v1058_v58 = vpop.trf.xlu0 }
 0x18a   : > { %1074 = vst [vmem:[%s243_s29] sm:$0xff] %v1058_v58 }
 0x18b   : > { %1523 = shalt.err (!%p1520_p9)
}
 0x18c   : > { %s1524_s20 = scalar_lea.hbm %s1089_s8, 128  ;;  %s1528_s27 = scalar_lea.hbm %s1880_s3, 512 }
 0x18d   : > { %p1525_p10 = scmp.ne.s32.totalorder %s1089_s8, %s1524_s20  ;;  %p1529_p13 = scmp.lt.s32.totalorder %s1089_s8, %s1880_s3 }
 0x18e   : > { %p1530_p0 = scmp.lt.s32.totalorder %s1528_s27, %s1524_s20 }
 0x18f   : > { %p1526_p11 = pnand %p1525_p10, %p1678_p3 }
 0x190   : > { %p1531_p1 = por %p1530_p0, %p1529_p13 }
 0x191   : > { %p1527_p12 = pneg %p1526_p11 }
 0x193   : > { %p1532_p2 = pnand %p1531_p1, %p1527_p12 }
 0x195   : > { %1535 = shalt.err (!%p1532_p2)
}
 0x196   : > { %1410 = dma.vmem_to_hbm [thread:$0]  (%p1678_p3), %s1828_s4, 128, %s1089_s8, %s1076_s9  }
 0x197 PF: > { %p1416_p4 = scmp.ge.s32.totalorder %s1602_s19, 2  ;;  %s1103_s5 = sand.u32 1, %s1574_s12  }
 0x198   : > { %s1104_s6 = scalar_lea.sflag [#allocation4], %s1103_s5 }
 0x199   : > { %p1413_p5 = pnand %p1416_p4, %p1687_p8 }
 0x19b   : > { %p1414_p6 = pneg %p1413_p5 }
 0x19d   : > { %1569 = dma.done.wait (%p1414_p6), %s1104_s6, 128  }
 0x19e   : > { %1571 = vsyncadd (%p1414_p6), %s1104_s6, 4294967168  ;;  %s16_s19 = sadd.s32 1, %s1602_s19   ;;  %s1883_s12 = smov %s1578_s13 }
 0x19f   : > { %p13_p7 = scmp.ge.s32.totalorder %s16_s19, 6   ;;  %s1884_s13 = smov %s1582_s14 }
 0x1a0   : > { %s1885_s14 = smov %s1696_s30  ;;  %s1886_s15 = smov %s1594_s17 }
 0x1a1   : > { %s1887_s16 = smov %s1598_s18  ;;  %s1888_s17 = smov %s1891_s22 }
 0x1a2   : > { %s1889_s18 = smov %s1895_s23  ;;  %15 = sbr.rel (!%p13_p7) target bundleno = 5 (0x5), region = 74 }
 0x1a7   :  { %1109 = vsyncpa [#allocation4], 1 }
 0x1a8   :  { %1111 = vsyncpa [#allocation4 + $0x1], 1 }

</bundles_post_ra>
